<compile_context>
chip_gen: v7x
topology: tpu7x:2x2x1
jax: 0.10.0
libtpu: 0.0.40
codegen_flags: <defaults>
</compile_context>

<pallas_src>
import math
import functools

import jax
import jax.numpy as jnp
from jax import lax
from jax.experimental import pallas as pl
from jax.experimental.pallas import tpu as pltpu


def _attn_kernel(inv_sqrt_d, heads_per_block, d_head,
                 hid_ref, pos_ref, w_ref, b_ref, amask_ref, mcol_ref,
                 out_ref):
    # Block shapes for grid point (b, hblk):
    #   hid_ref, pos_ref : (1, S, H)        bf16
    #   w_ref            : (1, H, 3*HB)     bf16   fused [Wq | Wk | Wv] head block
    #   b_ref            : (1, 1, 3*HB)     f32    fused [bq | bk | bv]
    #   amask_ref        : (1, 1, S)        f32    additive attention mask (batch b)
    #   mcol_ref         : (1, S, 1)        f32    1 - bbox_pos_mask (batch b), column form
    #   out_ref          : (1, S, HB)       bf16   slice of the (B, S, H) context
    f32 = jnp.float32
    bf16 = jnp.bfloat16
    HB = heads_per_block * d_head

    hid = hid_ref[0]                       # (S, H)  bf16
    pos = pos_ref[0]                       # (S, H)  bf16
    w_all = w_ref[0]                       # (H, 3HB) bf16
    b_all = b_ref[0]                       # (1, 3HB) f32
    amask = amask_ref[0]                   # (1, S)  f32
    mcol = mcol_ref[0]                     # (S, 1)  f32  (= 1 - bbox_pos_mask)

    # Fused projections: one wide-N MXU matmul for Q/K/V, one for Qpos/Kpos.
    proj = jnp.dot(hid, w_all, preferred_element_type=f32) + b_all          # (S, 3HB)
    w_qk = w_ref[0, :, :2 * HB]                                             # (H, 2HB)
    pproj = jnp.dot(pos, w_qk, preferred_element_type=f32) + b_all[:, :2 * HB]  # (S, 2HB)

    q = proj[:, :HB]                       # (S, HB) f32
    k = proj[:, HB:2 * HB]
    v = proj[:, 2 * HB:]
    qp = pproj[:, :HB]
    kp = pproj[:, HB:]

    # Fold 1/sqrt(d) into the QK^T LHS and into the pos LHS; fold the bbox mask outer
    # product m[i]*m[j] into the pos matmul operands (row factor -> LHS, col -> Kp).
    # bbox_pos_scores = (Q*Qp) Kp^T + Qp Kp^T == ((Q + 1) * Qp) Kp^T
    # All score-matmul operands cast to bf16 for MXU rate; accumulate in f32.
    q_s = (q * inv_sqrt_d).astype(bf16)                                     # (S, HB)
    pos_lhs = (((q + 1.0) * qp) * (inv_sqrt_d * mcol)).astype(bf16)         # (S, HB)
    k_bf = k.astype(bf16)                                                   # (S, HB)
    kp_m = (kp * mcol).astype(bf16)                                         # (S, HB)
    v_bf = v.astype(bf16)                                                   # (S, HB)

    dnums = (((1,), (1,)), ((), ()))       # contract on last dim, no batch -> (S, S)

    ctx_parts = []
    for h in range(heads_per_block):       # small static constant
        sl = slice(h * d_head, (h + 1) * d_head)

        # Merged QK^T + positional-score matmul: one pass with contraction K = 2*d.
        lhs = jnp.concatenate([q_s[:, sl], pos_lhs[:, sl]], axis=-1)        # (S, 2d) bf16
        rhs = jnp.concatenate([k_bf[:, sl], kp_m[:, sl]], axis=-1)          # (S, 2d) bf16
        scores = lax.dot_general(lhs, rhs, dnums,
                                 preferred_element_type=f32)                # (S, S) f32
        scores = scores + amask                                             # additive mask

        mx = jnp.max(scores, axis=-1, keepdims=True)
        e = jnp.exp(scores - mx)                                            # (S, S) f32
        rowsum = jnp.sum(e, axis=-1, keepdims=True)                         # (S, 1)

        # Deferred normalization: scale the (S, d) context, not the (S, S) probs.
        ctx = jnp.dot(e.astype(bf16), v_bf[:, sl],
                      preferred_element_type=f32)                           # (S, d)
        ctx = ctx * pl.reciprocal(rowsum, approx=True)
        ctx_parts.append(ctx)

    # Single lane-dense full-width store of the head block.
    out_ref[0] = jnp.concatenate(ctx_parts, axis=-1).astype(out_ref.dtype)  # (S, HB)


def _pick_heads_per_block(num_heads, d_head, target_lanes=256):
    """Pick hb | num_heads with hb*d >= target_lanes and (hb*d) % 128 == 0.

    Falls back to any lane-aligned divisor, then to all heads (HB == H, which is
    always a legal full-extent block).
    """
    best_aligned = None
    for cand in range(1, num_heads + 1):
        if num_heads % cand != 0:
            continue
        hb_lanes = cand * d_head
        if hb_lanes % 128 == 0:
            if best_aligned is None:
                best_aligned = cand
            if hb_lanes >= target_lanes:
                return cand
    if best_aligned is not None:
        return best_aligned
    return num_heads


def layout_roberta_self_attention(hidden_states, bbox_pos_emb, attention_mask,
                                  bbox_pos_mask, params, num_heads,
                                  out_dtype=jnp.bfloat16):
    """Pallas implementation of LayoutRobertaSelfAttention.forward (pdpdq_ws / absolute).

    hidden_states : (B, S, H) f32
    bbox_pos_emb  : (S, B, H) f32  (PyTorch layout; transposed to (B, S, H) here)
    attention_mask: (B, S) f32, additive (0 / -1e9)
    bbox_pos_mask : (B, S) f32, binary
    Returns the context layer as (B, S, H) in `out_dtype` (bf16 by default to halve
    HBM writeback; pass jnp.float32 for an exact-layout f32 output).
    """
    B, S, H = hidden_states.shape
    d = H // num_heads
    hb = _pick_heads_per_block(num_heads, d, target_lanes=256)
    HB = hb * d
    nhb = num_heads // hb            # number of head blocks (grid axis)

    wq, bq = params["wq"], params["bq"]   # nn.Linear layout: W (out=H, in=H), b (H,)
    wk, bk = params["wk"], params["bk"]
    wv, bv = params["wv"], params["bv"]

    def blockify_w(w):
        # y = x @ W.T ; outputs are head-major -> per head block (nhb, H, HB).
        return jnp.transpose(w.T.reshape(H, nhb, HB), (1, 0, 2))

    def blockify_b(b):
        return b.reshape(nhb, 1, HB)

    # Fused per-head-block weights/biases: [Wq | Wk | Wv] along N -> (nhb, H, 3HB).
    w_fused = jnp.concatenate(
        [blockify_w(wq), blockify_w(wk), blockify_w(wv)], axis=-1).astype(jnp.bfloat16)
    b_fused = jnp.concatenate(
        [blockify_b(bq), blockify_b(bk), blockify_b(bv)], axis=-1).astype(jnp.float32)

    hid_bf = hidden_states.astype(jnp.bfloat16)                            # (B, S, H)
    pos_bf = jnp.transpose(bbox_pos_emb, (1, 0, 2)).astype(jnp.bfloat16)   # (B, S, H)
    amask = attention_mask.reshape(B, 1, S).astype(jnp.float32)
    mcol = (1.0 - bbox_pos_mask.astype(jnp.float32)).reshape(B, S, 1)

    kernel = functools.partial(_attn_kernel, 1.0 / math.sqrt(d), hb, d)

    out_bytes = jnp.dtype(out_dtype).itemsize
    flops = B * (10 * S * H * H + 6 * S * S * H)
    transcendentals = B * num_heads * S * S
    bytes_accessed = int(2 * B * S * H * 2            # hid + pos (bf16)
                         + B * 3 * H * H * 2          # fused weights re-fetched per batch
                         + B * 3 * H * 4              # biases
                         + 2 * B * S * 4              # masks
                         + B * S * H * out_bytes)     # output

    # Rough per-step VMEM working set -> explicit scoped-VMEM limit (v5e default is 16 MiB).
    vmem_need = int(
        2 * 2 * S * H * 2                             # hid + pos, double-buffered bf16
        + 2 * (H * 3 * HB * 2 + 3 * HB * 4)           # fused weight + bias, double-buffered
        + 2 * S * HB * out_bytes                      # output block, double-buffered
        + S * 3 * HB * 4 + S * 2 * HB * 4             # projection temporaries (f32)
        + 5 * S * HB * 2                              # bf16 score-matmul operands
        + hb * S * S * 4                              # unrolled per-head (S,S) temporaries
        + 2 * S * HB * 4)                             # ctx parts / concat
    vmem_limit = int(min(max(vmem_need * 3 // 2, 32 * 1024 * 1024), 96 * 1024 * 1024))

    context = pl.pallas_call(
        kernel,
        out_shape=jax.ShapeDtypeStruct((B, S, H), out_dtype),
        grid_spec=pltpu.PrefetchScalarGridSpec(
            num_scalar_prefetch=0,
            grid=(B, nhb),
            in_specs=[
                pl.BlockSpec((1, S, H), lambda b, h: (b, 0, 0)),      # hidden_states (bf16)
                pl.BlockSpec((1, S, H), lambda b, h: (b, 0, 0)),      # bbox pos emb  (bf16)
                pl.BlockSpec((1, H, 3 * HB), lambda b, h: (h, 0, 0)),  # fused W head block
                pl.BlockSpec((1, 1, 3 * HB), lambda b, h: (h, 0, 0)),  # fused b head block
                pl.BlockSpec((1, 1, S), lambda b, h: (b, 0, 0)),      # attention_mask (add.)
                pl.BlockSpec((1, S, 1), lambda b, h: (b, 0, 0)),      # 1 - bbox_pos_mask col
            ],
            # Output written directly in (B, S, H) layout, lane-dense HB-wide block.
            out_specs=pl.BlockSpec((1, S, HB), lambda b, h: (b, 0, h)),
        ),
        compiler_params=pltpu.CompilerParams(
            dimension_semantics=("parallel", "parallel"),
            vmem_limit_bytes=vmem_limit),
        cost_estimate=pl.CostEstimate(flops=flops,
                                      transcendentals=transcendentals,
                                      bytes_accessed=bytes_accessed),
    )(hid_bf, pos_bf, w_fused, b_fused, amask, mcol)

    return context


def _reference(hidden_states, bbox_pos_emb, attention_mask, bbox_pos_mask,
               params, num_heads):
    """Pure-JAX f32 reference mirroring the PyTorch forward."""
    B, S, H = hidden_states.shape
    d = H // num_heads

    def lin(x, w, b):
        return x @ w.T + b

    def split(x):  # (B,S,H) -> (B,n,S,d)
        return jnp.transpose(x.reshape(B, S, num_heads, d), (0, 2, 1, 3))

    q = split(lin(hidden_states, params["wq"], params["bq"]))
    k = split(lin(hidden_states, params["wk"], params["bk"]))
    v = split(lin(hidden_states, params["wv"], params["bv"]))

    scores = jnp.einsum("bnid,bnjd->bnij", q, k)

    qp = lin(bbox_pos_emb, params["wq"], params["bq"]).reshape(S, B, num_heads, d)
    kp = lin(bbox_pos_emb, params["wk"], params["bk"]).reshape(S, B, num_heads, d)
    qp = jnp.transpose(qp, (1, 2, 0, 3))
    kp = jnp.transpose(kp, (1, 2, 0, 3))
    pos_scores = jnp.einsum("bnid,bnjd->bnij", q * qp, kp) + \
        jnp.einsum("bnid,bnjd->bnij", qp, kp)

    m = 1.0 - bbox_pos_mask                                    # (B,S)
    mask_final = m[:, :, None] * m[:, None, :]                 # (B,S,S)
    pos_scores = pos_scores * mask_final[:, None]

    scores = (scores + pos_scores) / math.sqrt(d)
    scores = scores + attention_mask[:, None, None, :]
    probs = jax.nn.softmax(scores, axis=-1)
    ctx = jnp.einsum("bnij,bnjd->bnid", probs, v)
    return jnp.transpose(ctx, (0, 2, 1, 3)).reshape(B, S, H)


if __name__ == "__main__":
    B, S, H, NH = 2, 8, 32, 4

    key = jax.random.PRNGKey(0)
    keys = jax.random.split(key, 10)
    hidden_states = jax.random.normal(keys[0], (B, S, H), dtype=jnp.float32)
    bbox_pos_emb = jax.random.normal(keys[1], (S, B, H), dtype=jnp.float32)
    # additive attention mask: last 2 positions of batch 1 are padded
    attention_mask = jnp.zeros((B, S), dtype=jnp.float32).at[1, -2:].set(-1e9)
    bbox_pos_mask = jax.random.bernoulli(keys[2], 0.2, (B, S)).astype(jnp.float32)

    scale = 0.02
    params = {
        "wq": scale * jax.random.normal(keys[3], (H, H), dtype=jnp.float32),
        "bq": scale * jax.random.normal(keys[4], (H,), dtype=jnp.float32),
        "wk": scale * jax.random.normal(keys[5], (H, H), dtype=jnp.float32),
        "bk": scale * jax.random.normal(keys[6], (H,), dtype=jnp.float32),
        "wv": scale * jax.random.normal(keys[7], (H, H), dtype=jnp.float32),
        "bv": scale * jax.random.normal(keys[8], (H,), dtype=jnp.float32),
    }

    out = layout_roberta_self_attention(
        hidden_states, bbox_pos_emb, attention_mask, bbox_pos_mask, params, NH)
    out = jax.block_until_ready(out)

    ref = _reference(hidden_states, bbox_pos_emb, attention_mask, bbox_pos_mask,
                     params, NH)
    assert out.shape == (B, S, H)
    # bf16 matmul operands / bf16 output + approx reciprocal -> looser tolerance vs f32 ref
    assert jnp.allclose(out.astype(jnp.float32), ref, rtol=2e-2, atol=2e-2), \
        "mismatch vs reference"

    print("KERNEL_OK")
</pallas_src>

<mosaic_0001>
module attributes {stable_mosaic.version = 11 : i64} {
  func.func @_attn_kernel(%arg0: i32, %arg1: i32, %arg2: memref<1x8x32xbf16, #tpu.memory_space<vmem>>, %arg3: memref<1x8x32xbf16, #tpu.memory_space<vmem>>, %arg4: memref<1x32x96xbf16, #tpu.memory_space<vmem>>, %arg5: memref<1x1x96xf32, #tpu.memory_space<vmem>>, %arg6: memref<1x1x8xf32, #tpu.memory_space<vmem>>, %arg7: memref<1x8x1xf32, #tpu.memory_space<vmem>>, %arg8: memref<1x8x32xbf16, #tpu.memory_space<vmem>>) attributes {dimension_semantics = [#tpu.dimension_semantics<parallel>, #tpu.dimension_semantics<parallel>], iteration_bounds = array<i64: 2, 1>, scalar_prefetch = 0 : i64, scratch_operands = 0 : i64, tpu.core_type = #tpu.core_type<tc>, window_params = [{transform_indices = @transform_0, window_bounds = array<i64: 1, 8, 32>}, {transform_indices = @transform_1, window_bounds = array<i64: 1, 8, 32>}, {transform_indices = @transform_2, window_bounds = array<i64: 1, 32, 96>}, {transform_indices = @transform_3, window_bounds = array<i64: 1, 1, 96>}, {transform_indices = @transform_4, window_bounds = array<i64: 1, 1, 8>}, {transform_indices = @transform_5, window_bounds = array<i64: 1, 8, 1>}, {transform_indices = @transform_6, window_bounds = array<i64: 1, 8, 32>}]} {
    %c0 = arith.constant 0 : index
    %c0_0 = arith.constant 0 : index
    %c0_1 = arith.constant 0 : index
    %0 = vector.load %arg2[%c0, %c0_0, %c0_1] : memref<1x8x32xbf16, #tpu.memory_space<vmem>>, vector<1x8x32xbf16>
    %1 = vector.shape_cast %0 : vector<1x8x32xbf16> to vector<8x32xbf16>
    %c0_2 = arith.constant 0 : index
    %c0_3 = arith.constant 0 : index
    %c0_4 = arith.constant 0 : index
    %2 = vector.load %arg3[%c0_2, %c0_3, %c0_4] : memref<1x8x32xbf16, #tpu.memory_space<vmem>>, vector<1x8x32xbf16>
    %3 = vector.shape_cast %2 : vector<1x8x32xbf16> to vector<8x32xbf16>
    %c0_5 = arith.constant 0 : index
    %c0_6 = arith.constant 0 : index
    %c0_7 = arith.constant 0 : index
    %4 = vector.load %arg4[%c0_5, %c0_6, %c0_7] : memref<1x32x96xbf16, #tpu.memory_space<vmem>>, vector<1x32x96xbf16>
    %5 = vector.shape_cast %4 : vector<1x32x96xbf16> to vector<32x96xbf16>
    %c0_8 = arith.constant 0 : index
    %c0_9 = arith.constant 0 : index
    %c0_10 = arith.constant 0 : index
    %6 = vector.load %arg5[%c0_8, %c0_9, %c0_10] : memref<1x1x96xf32, #tpu.memory_space<vmem>>, vector<1x1x96xf32>
    %7 = vector.shape_cast %6 : vector<1x1x96xf32> to vector<1x96xf32>
    %c0_11 = arith.constant 0 : index
    %c0_12 = arith.constant 0 : index
    %c0_13 = arith.constant 0 : index
    %8 = vector.load %arg6[%c0_11, %c0_12, %c0_13] : memref<1x1x8xf32, #tpu.memory_space<vmem>>, vector<1x1x8xf32>
    %9 = vector.shape_cast %8 : vector<1x1x8xf32> to vector<1x8xf32>
    %c0_14 = arith.constant 0 : index
    %c0_15 = arith.constant 0 : index
    %c0_16 = arith.constant 0 : index
    %10 = vector.load %arg7[%c0_14, %c0_15, %c0_16] : memref<1x8x1xf32, #tpu.memory_space<vmem>>, vector<1x8x1xf32>
    %11 = vector.shape_cast %10 : vector<1x8x1xf32> to vector<8x1xf32>
    %cst = arith.constant dense<0.000000e+00> : vector<8x96xf32>
    %12 = tpu.matmul %1, %5, %cst {dimension_numbers = #tpu.dot_dimension_numbers<[1], [0], [0], [1], [0, 0, 1, 1], [], []>} : vector<8x32xbf16>, vector<32x96xbf16>, vector<8x96xf32> -> vector<8x96xf32>
    %13 = vector.broadcast %7 : vector<1x96xf32> to vector<8x96xf32>
    %14 = arith.addf %12, %13 : vector<8x96xf32>
    %c0_17 = arith.constant 0 : index
    %c0_18 = arith.constant 0 : index
    %c0_19 = arith.constant 0 : index
    %15 = vector.load %arg4[%c0_17, %c0_18, %c0_19] : memref<1x32x96xbf16, #tpu.memory_space<vmem>>, vector<1x32x64xbf16>
    %16 = vector.shape_cast %15 : vector<1x32x64xbf16> to vector<32x64xbf16>
    %cst_20 = arith.constant dense<0.000000e+00> : vector<8x64xf32>
    %17 = tpu.matmul %3, %16, %cst_20 {dimension_numbers = #tpu.dot_dimension_numbers<[1], [0], [0], [1], [0, 0, 1, 1], [], []>} : vector<8x32xbf16>, vector<32x64xbf16>, vector<8x64xf32> -> vector<8x64xf32>
    %18 = vector.extract_strided_slice %7 {offsets = [0, 0], sizes = [1, 64], strides = [1, 1]} : vector<1x96xf32> to vector<1x64xf32>
    %19 = vector.broadcast %18 : vector<1x64xf32> to vector<8x64xf32>
    %20 = arith.addf %17, %19 : vector<8x64xf32>
    %21 = vector.extract_strided_slice %14 {offsets = [0, 0], sizes = [8, 32], strides = [1, 1]} : vector<8x96xf32> to vector<8x32xf32>
    %22 = vector.extract_strided_slice %14 {offsets = [0, 32], sizes = [8, 32], strides = [1, 1]} : vector<8x96xf32> to vector<8x32xf32>
    %23 = vector.extract_strided_slice %14 {offsets = [0, 64], sizes = [8, 32], strides = [1, 1]} : vector<8x96xf32> to vector<8x32xf32>
    %24 = vector.extract_strided_slice %20 {offsets = [0, 0], sizes = [8, 32], strides = [1, 1]} : vector<8x64xf32> to vector<8x32xf32>
    %25 = vector.extract_strided_slice %20 {offsets = [0, 32], sizes = [8, 32], strides = [1, 1]} : vector<8x64xf32> to vector<8x32xf32>
    %cst_21 = arith.constant 0.353553385 : f32
    %26 = vector.broadcast %cst_21 : f32 to vector<8x32xf32>
    %27 = arith.mulf %21, %26 : vector<8x32xf32>
    %28 = arith.truncf %27 : vector<8x32xf32> to vector<8x32xbf16>
    %cst_22 = arith.constant 1.000000e+00 : f32
    %29 = vector.broadcast %cst_22 : f32 to vector<8x32xf32>
    %30 = arith.addf %21, %29 : vector<8x32xf32>
    %31 = arith.mulf %30, %24 : vector<8x32xf32>
    %cst_23 = arith.constant 0.353553385 : f32
    %32 = vector.broadcast %cst_23 : f32 to vector<8x1xf32>
    %33 = arith.mulf %32, %11 : vector<8x1xf32>
    %34 = vector.broadcast %33 : vector<8x1xf32> to vector<8x32xf32>
    %35 = arith.mulf %31, %34 : vector<8x32xf32>
    %36 = arith.truncf %35 : vector<8x32xf32> to vector<8x32xbf16>
    %37 = arith.truncf %22 : vector<8x32xf32> to vector<8x32xbf16>
    %38 = vector.broadcast %11 : vector<8x1xf32> to vector<8x32xf32>
    %39 = arith.mulf %25, %38 : vector<8x32xf32>
    %40 = arith.truncf %39 : vector<8x32xf32> to vector<8x32xbf16>
    %41 = arith.truncf %23 : vector<8x32xf32> to vector<8x32xbf16>
    %42 = vector.extract_strided_slice %28 {offsets = [0, 0], sizes = [8, 8], strides = [1, 1]} : vector<8x32xbf16> to vector<8x8xbf16>
    %43 = vector.extract_strided_slice %36 {offsets = [0, 0], sizes = [8, 8], strides = [1, 1]} : vector<8x32xbf16> to vector<8x8xbf16>
    %44 = tpu.concatenate %42, %43 in 1 : vector<8x8xbf16>, vector<8x8xbf16> -> vector<8x16xbf16>
    %45 = vector.extract_strided_slice %37 {offsets = [0, 0], sizes = [8, 8], strides = [1, 1]} : vector<8x32xbf16> to vector<8x8xbf16>
    %46 = vector.extract_strided_slice %40 {offsets = [0, 0], sizes = [8, 8], strides = [1, 1]} : vector<8x32xbf16> to vector<8x8xbf16>
    %47 = tpu.concatenate %45, %46 in 1 : vector<8x8xbf16>, vector<8x8xbf16> -> vector<8x16xbf16>
    %cst_24 = arith.constant dense<0.000000e+00> : vector<8x8xf32>
    %48 = tpu.matmul %44, %47, %cst_24 {dimension_numbers = #tpu.dot_dimension_numbers<[1], [1], [0], [0], [0, 0, 1, 0], [], []>} : vector<8x16xbf16>, vector<8x16xbf16>, vector<8x8xf32> -> vector<8x8xf32>
    %49 = vector.broadcast %9 : vector<1x8xf32> to vector<8x8xf32>
    %50 = arith.addf %48, %49 : vector<8x8xf32>
    %cst_25 = arith.constant dense<0xFF800000> : vector<8xf32>
    %51 = vector.multi_reduction <maximumf>, %50, %cst_25 [1] : vector<8x8xf32> to vector<8xf32>
    %52 = vector.shape_cast %51 : vector<8xf32> to vector<8x1xf32>
    %53 = vector.broadcast %52 : vector<8x1xf32> to vector<8x8xf32>
    %54 = arith.subf %50, %53 : vector<8x8xf32>
    %55 = math.exp %54 : vector<8x8xf32>
    %cst_26 = arith.constant dense<0.000000e+00> : vector<8xf32>
    %56 = vector.multi_reduction <add>, %55, %cst_26 [1] : vector<8x8xf32> to vector<8xf32>
    %57 = vector.shape_cast %56 : vector<8xf32> to vector<8x1xf32>
    %58 = arith.truncf %55 : vector<8x8xf32> to vector<8x8xbf16>
    %59 = vector.extract_strided_slice %41 {offsets = [0, 0], sizes = [8, 8], strides = [1, 1]} : vector<8x32xbf16> to vector<8x8xbf16>
    %cst_27 = arith.constant dense<0.000000e+00> : vector<8x8xf32>
    %60 = tpu.matmul %58, %59, %cst_27 {dimension_numbers = #tpu.dot_dimension_numbers<[1], [0], [0], [1], [0, 0, 1, 1], [], []>} : vector<8x8xbf16>, vector<8x8xbf16>, vector<8x8xf32> -> vector<8x8xf32>
    %61 = tpu.reciprocal %57 {approx = true} : vector<8x1xf32> -> vector<8x1xf32>
    %62 = vector.broadcast %61 : vector<8x1xf32> to vector<8x8xf32>
    %63 = arith.mulf %60, %62 : vector<8x8xf32>
    %64 = vector.extract_strided_slice %28 {offsets = [0, 8], sizes = [8, 8], strides = [1, 1]} : vector<8x32xbf16> to vector<8x8xbf16>
    %65 = vector.extract_strided_slice %36 {offsets = [0, 8], sizes = [8, 8], strides = [1, 1]} : vector<8x32xbf16> to vector<8x8xbf16>
    %66 = tpu.concatenate %64, %65 in 1 : vector<8x8xbf16>, vector<8x8xbf16> -> vector<8x16xbf16>
    %67 = vector.extract_strided_slice %37 {offsets = [0, 8], sizes = [8, 8], strides = [1, 1]} : vector<8x32xbf16> to vector<8x8xbf16>
    %68 = vector.extract_strided_slice %40 {offsets = [0, 8], sizes = [8, 8], strides = [1, 1]} : vector<8x32xbf16> to vector<8x8xbf16>
    %69 = tpu.concatenate %67, %68 in 1 : vector<8x8xbf16>, vector<8x8xbf16> -> vector<8x16xbf16>
    %cst_28 = arith.constant dense<0.000000e+00> : vector<8x8xf32>
    %70 = tpu.matmul %66, %69, %cst_28 {dimension_numbers = #tpu.dot_dimension_numbers<[1], [1], [0], [0], [0, 0, 1, 0], [], []>} : vector<8x16xbf16>, vector<8x16xbf16>, vector<8x8xf32> -> vector<8x8xf32>
    %71 = vector.broadcast %9 : vector<1x8xf32> to vector<8x8xf32>
    %72 = arith.addf %70, %71 : vector<8x8xf32>
    %cst_29 = arith.constant dense<0xFF800000> : vector<8xf32>
    %73 = vector.multi_reduction <maximumf>, %72, %cst_29 [1] : vector<8x8xf32> to vector<8xf32>
    %74 = vector.shape_cast %73 : vector<8xf32> to vector<8x1xf32>
    %75 = vector.broadcast %74 : vector<8x1xf32> to vector<8x8xf32>
    %76 = arith.subf %72, %75 : vector<8x8xf32>
    %77 = math.exp %76 : vector<8x8xf32>
    %cst_30 = arith.constant dense<0.000000e+00> : vector<8xf32>
    %78 = vector.multi_reduction <add>, %77, %cst_30 [1] : vector<8x8xf32> to vector<8xf32>
    %79 = vector.shape_cast %78 : vector<8xf32> to vector<8x1xf32>
    %80 = arith.truncf %77 : vector<8x8xf32> to vector<8x8xbf16>
    %81 = vector.extract_strided_slice %41 {offsets = [0, 8], sizes = [8, 8], strides = [1, 1]} : vector<8x32xbf16> to vector<8x8xbf16>
    %cst_31 = arith.constant dense<0.000000e+00> : vector<8x8xf32>
    %82 = tpu.matmul %80, %81, %cst_31 {dimension_numbers = #tpu.dot_dimension_numbers<[1], [0], [0], [1], [0, 0, 1, 1], [], []>} : vector<8x8xbf16>, vector<8x8xbf16>, vector<8x8xf32> -> vector<8x8xf32>
    %83 = tpu.reciprocal %79 {approx = true} : vector<8x1xf32> -> vector<8x1xf32>
    %84 = vector.broadcast %83 : vector<8x1xf32> to vector<8x8xf32>
    %85 = arith.mulf %82, %84 : vector<8x8xf32>
    %86 = vector.extract_strided_slice %28 {offsets = [0, 16], sizes = [8, 8], strides = [1, 1]} : vector<8x32xbf16> to vector<8x8xbf16>
    %87 = vector.extract_strided_slice %36 {offsets = [0, 16], sizes = [8, 8], strides = [1, 1]} : vector<8x32xbf16> to vector<8x8xbf16>
    %88 = tpu.concatenate %86, %87 in 1 : vector<8x8xbf16>, vector<8x8xbf16> -> vector<8x16xbf16>
    %89 = vector.extract_strided_slice %37 {offsets = [0, 16], sizes = [8, 8], strides = [1, 1]} : vector<8x32xbf16> to vector<8x8xbf16>
    %90 = vector.extract_strided_slice %40 {offsets = [0, 16], sizes = [8, 8], strides = [1, 1]} : vector<8x32xbf16> to vector<8x8xbf16>
    %91 = tpu.concatenate %89, %90 in 1 : vector<8x8xbf16>, vector<8x8xbf16> -> vector<8x16xbf16>
    %cst_32 = arith.constant dense<0.000000e+00> : vector<8x8xf32>
    %92 = tpu.matmul %88, %91, %cst_32 {dimension_numbers = #tpu.dot_dimension_numbers<[1], [1], [0], [0], [0, 0, 1, 0], [], []>} : vector<8x16xbf16>, vector<8x16xbf16>, vector<8x8xf32> -> vector<8x8xf32>
    %93 = vector.broadcast %9 : vector<1x8xf32> to vector<8x8xf32>
    %94 = arith.addf %92, %93 : vector<8x8xf32>
    %cst_33 = arith.constant dense<0xFF800000> : vector<8xf32>
    %95 = vector.multi_reduction <maximumf>, %94, %cst_33 [1] : vector<8x8xf32> to vector<8xf32>
    %96 = vector.shape_cast %95 : vector<8xf32> to vector<8x1xf32>
    %97 = vector.broadcast %96 : vector<8x1xf32> to vector<8x8xf32>
    %98 = arith.subf %94, %97 : vector<8x8xf32>
    %99 = math.exp %98 : vector<8x8xf32>
    %cst_34 = arith.constant dense<0.000000e+00> : vector<8xf32>
    %100 = vector.multi_reduction <add>, %99, %cst_34 [1] : vector<8x8xf32> to vector<8xf32>
    %101 = vector.shape_cast %100 : vector<8xf32> to vector<8x1xf32>
    %102 = arith.truncf %99 : vector<8x8xf32> to vector<8x8xbf16>
    %103 = vector.extract_strided_slice %41 {offsets = [0, 16], sizes = [8, 8], strides = [1, 1]} : vector<8x32xbf16> to vector<8x8xbf16>
    %cst_35 = arith.constant dense<0.000000e+00> : vector<8x8xf32>
    %104 = tpu.matmul %102, %103, %cst_35 {dimension_numbers = #tpu.dot_dimension_numbers<[1], [0], [0], [1], [0, 0, 1, 1], [], []>} : vector<8x8xbf16>, vector<8x8xbf16>, vector<8x8xf32> -> vector<8x8xf32>
    %105 = tpu.reciprocal %101 {approx = true} : vector<8x1xf32> -> vector<8x1xf32>
    %106 = vector.broadcast %105 : vector<8x1xf32> to vector<8x8xf32>
    %107 = arith.mulf %104, %106 : vector<8x8xf32>
    %108 = vector.extract_strided_slice %28 {offsets = [0, 24], sizes = [8, 8], strides = [1, 1]} : vector<8x32xbf16> to vector<8x8xbf16>
    %109 = vector.extract_strided_slice %36 {offsets = [0, 24], sizes = [8, 8], strides = [1, 1]} : vector<8x32xbf16> to vector<8x8xbf16>
    %110 = tpu.concatenate %108, %109 in 1 : vector<8x8xbf16>, vector<8x8xbf16> -> vector<8x16xbf16>
    %111 = vector.extract_strided_slice %37 {offsets = [0, 24], sizes = [8, 8], strides = [1, 1]} : vector<8x32xbf16> to vector<8x8xbf16>
    %112 = vector.extract_strided_slice %40 {offsets = [0, 24], sizes = [8, 8], strides = [1, 1]} : vector<8x32xbf16> to vector<8x8xbf16>
    %113 = tpu.concatenate %111, %112 in 1 : vector<8x8xbf16>, vector<8x8xbf16> -> vector<8x16xbf16>
    %cst_36 = arith.constant dense<0.000000e+00> : vector<8x8xf32>
    %114 = tpu.matmul %110, %113, %cst_36 {dimension_numbers = #tpu.dot_dimension_numbers<[1], [1], [0], [0], [0, 0, 1, 0], [], []>} : vector<8x16xbf16>, vector<8x16xbf16>, vector<8x8xf32> -> vector<8x8xf32>
    %115 = vector.broadcast %9 : vector<1x8xf32> to vector<8x8xf32>
    %116 = arith.addf %114, %115 : vector<8x8xf32>
    %cst_37 = arith.constant dense<0xFF800000> : vector<8xf32>
    %117 = vector.multi_reduction <maximumf>, %116, %cst_37 [1] : vector<8x8xf32> to vector<8xf32>
    %118 = vector.shape_cast %117 : vector<8xf32> to vector<8x1xf32>
    %119 = vector.broadcast %118 : vector<8x1xf32> to vector<8x8xf32>
    %120 = arith.subf %116, %119 : vector<8x8xf32>
    %121 = math.exp %120 : vector<8x8xf32>
    %cst_38 = arith.constant dense<0.000000e+00> : vector<8xf32>
    %122 = vector.multi_reduction <add>, %121, %cst_38 [1] : vector<8x8xf32> to vector<8xf32>
    %123 = vector.shape_cast %122 : vector<8xf32> to vector<8x1xf32>
    %124 = arith.truncf %121 : vector<8x8xf32> to vector<8x8xbf16>
    %125 = vector.extract_strided_slice %41 {offsets = [0, 24], sizes = [8, 8], strides = [1, 1]} : vector<8x32xbf16> to vector<8x8xbf16>
    %cst_39 = arith.constant dense<0.000000e+00> : vector<8x8xf32>
    %126 = tpu.matmul %124, %125, %cst_39 {dimension_numbers = #tpu.dot_dimension_numbers<[1], [0], [0], [1], [0, 0, 1, 1], [], []>} : vector<8x8xbf16>, vector<8x8xbf16>, vector<8x8xf32> -> vector<8x8xf32>
    %127 = tpu.reciprocal %123 {approx = true} : vector<8x1xf32> -> vector<8x1xf32>
    %128 = vector.broadcast %127 : vector<8x1xf32> to vector<8x8xf32>
    %129 = arith.mulf %126, %128 : vector<8x8xf32>
    %130 = tpu.concatenate %63, %85, %107, %129 in 1 : vector<8x8xf32>, vector<8x8xf32>, vector<8x8xf32>, vector<8x8xf32> -> vector<8x32xf32>
    %131 = arith.truncf %130 : vector<8x32xf32> to vector<8x32xbf16>
    %c0_40 = arith.constant 0 : index
    %c0_41 = arith.constant 0 : index
    %c0_42 = arith.constant 0 : index
    %132 = vector.load %arg8[%c0_40, %c0_41, %c0_42] : memref<1x8x32xbf16, #tpu.memory_space<vmem>>, vector<1x8x32xbf16>
    %133 = vector.shape_cast %132 : vector<1x8x32xbf16> to vector<8x32xbf16>
    %134 = vector.shape_cast %131 : vector<8x32xbf16> to vector<1x8x32xbf16>
    tpu.vector_store %arg8[%c0_40, %c0_41, %c0_42], %134 {strides = array<i32>} : memref<1x8x32xbf16, #tpu.memory_space<vmem>>, vector<1x8x32xbf16>,
    return
  }
  func.func @transform_0(%arg0: i32, %arg1: i32) -> (i32, i32, i32) {
    %c0_i32 = arith.constant 0 : i32
    %c0_i32_0 = arith.constant 0 : i32
    %c0_i32_1 = arith.constant 0 : i32
    return %arg0, %c0_i32, %c0_i32_0 : i32, i32, i32
  }
  func.func @transform_1(%arg0: i32, %arg1: i32) -> (i32, i32, i32) {
    %c0_i32 = arith.constant 0 : i32
    %c0_i32_0 = arith.constant 0 : i32
    %c0_i32_1 = arith.constant 0 : i32
    return %arg0, %c0_i32, %c0_i32_0 : i32, i32, i32
  }
  func.func @transform_2(%arg0: i32, %arg1: i32) -> (i32, i32, i32) {
    %c0_i32 = arith.constant 0 : i32
    %c0_i32_0 = arith.constant 0 : i32
    %c0_i32_1 = arith.constant 0 : i32
    return %arg1, %c0_i32, %c0_i32_0 : i32, i32, i32
  }
  func.func @transform_3(%arg0: i32, %arg1: i32) -> (i32, i32, i32) {
    %c0_i32 = arith.constant 0 : i32
    %c0_i32_0 = arith.constant 0 : i32
    %c0_i32_1 = arith.constant 0 : i32
    return %arg1, %c0_i32, %c0_i32_0 : i32, i32, i32
  }
  func.func @transform_4(%arg0: i32, %arg1: i32) -> (i32, i32, i32) {
    %c0_i32 = arith.constant 0 : i32
    %c0_i32_0 = arith.constant 0 : i32
    %c0_i32_1 = arith.constant 0 : i32
    return %arg0, %c0_i32, %c0_i32_0 : i32, i32, i32
  }
  func.func @transform_5(%arg0: i32, %arg1: i32) -> (i32, i32, i32) {
    %c0_i32 = arith.constant 0 : i32
    %c0_i32_0 = arith.constant 0 : i32
    %c0_i32_1 = arith.constant 0 : i32
    return %arg0, %c0_i32, %c0_i32_0 : i32, i32, i32
  }
  func.func @transform_6(%arg0: i32, %arg1: i32) -> (i32, i32, i32) {
    %c0_i32 = arith.constant 0 : i32
    %c0_i32_0 = arith.constant 0 : i32
    return %arg0, %c0_i32, %arg1 : i32, i32, i32
  }
}

</mosaic_0001>

<bundles_post_ra>
// kernel: tpu_custom_call.1
= control target key start
LH: loop header
LB: loop body
LE: loop exit
PB: predicated region body
PF: predicated region fallthrough
CT: control target
= control target key end

     0   :  { %11 = vsyncpa [#allocation3], 0  ;;  %s1814_s0 = inlined_call_operand.vmem [shape: bf16[2,8,32], index: 0, kind: input, shape index: {}]   ;;  %s1815_s1 = inlined_call_operand.hbm [shape: bf16[2,8,32], index: 1, kind: input, shape index: {}]   ;;  %s1816_s2 = inlined_call_operand.vmem [shape: bf16[1,32,96], index: 2, kind: input, shape index: {}]   ;;  %s1817_s3 = inlined_call_operand.vmem [shape: f32[1,1,96], index: 3, kind: input, shape index: {}]   ;;  %s1818_s4 = inlined_call_operand.vmem [shape: f32[2,1,8], index: 4, kind: input, shape index: {}]   ;;  %s1819_s5 = inlined_call_operand.vmem [shape: f32[2,8,1], index: 5, kind: input, shape index: {}]   ;;  %s1820_s6 = inlined_call_operand.hbm [shape: bf16[2,8,32], index: 6, kind: output, shape index: {}]  }
   0x1   :  { %13 = vsyncpa [#allocation3 + $0x1], 0 }
   0x2   :  { %14 = vsyncpa [#allocation4], 0 }
   0x3   :  { %16 = vsyncpa [#allocation4 + $0x1], 0  ;;  %s1535_s21 = smov 0   ;;  %s1537_s22 = smov 0  }
   0x4   :  { %s1539_s23 = smov 0   ;;  %s1541_s24 = smov 0  }
   0x5   :  { %s1543_s25 = smov 0   ;;  %s1545_s26 = smov 0  }
   0x6 LB: > { %s1152_s27 = sadd.s32 4294967295, %s1479_s26   ;;  %s1153_s28 = sadd.s32 4294967294, %s1479_s26   ;;  %s1479_s26 = sphi %s1545_s26, %s22_s26   ;;  %s1475_s25 = sphi %s1543_s25, %s1838_s25   ;;  %s1471_s24 = sphi %s1541_s24, %s1837_s24   ;;  %s1467_s23 = sphi %s1539_s23, %s1836_s23   ;;  %s1463_s22 = sphi %s1537_s22, %s1835_s22   ;;  %s1459_s21 = sphi %s1535_s21, %s1834_s21  }
   0x7   : > { %s34_s29 = sadd.s32 1, %s1475_s25  ;;  %s67_s30 = sadd.s32 1, %s1467_s23 }
   0x8   : > { %p36_p0 = scmp.ge.s32.totalorder %s34_s29, 2  ;;  %p74_p1 = scmp.ne.s32.totalorder %s1467_s23, %s1463_s22 }
   0x9   : > { %p75_p2 = scmp.eq.s32.totalorder %s1479_s26, 0  ;;  %p80_p3 = scmp.ne.s32.totalorder %s1463_s22, %s1459_s21 }
   0xa   : > { %s1840_s29 = smov (%p36_p0, %s34_s29), 0  ;;  %p81_p5 = scmp.eq.s32.totalorder %s1152_s27, 0 }
   0xb   : > { %p1576_p4 = por %p75_p2, %p74_p1  ;;  %s64_s8 = ssub.s32 %s1475_s25, %s1840_s29 }
   0xc   : > { %p210_p6 = scmp.eq.s32.totalorder %s1152_s27, 1  ;;  %p65_p7 = scmp.eq.s32.totalorder %s64_s8, 0 }
   0xd   : > { %p1582_p8 = por %p81_p5, %p80_p3  ;;  %p216_p10 = scmp.eq.s32.totalorder %s1153_s28, 1 }
   0xe   : > { %p1586_p9 = por %p210_p6, %p74_p1  ;;  %p1281_p13 = scmp.lt.s32.totalorder %s1479_s26, 2 }
   0xf   : > { %s1591_s11 = scalar_select %p65_p7, %s1467_s23, %s67_s30  }
  0x10   : > { %s1825_s10 = scalar_select %p1586_p9, 1, 0 }
  0x11   : > { %p1593_p11 = por %p216_p10, %p80_p3  ;;  %s257_s13 = sand.u32 1, %s1467_s23  }
  0x12   : > { %s1158_s14 = sshll.u32 %s257_s13, 2  ;;  %s1159_s15 = sshll.u32 %s1475_s25, 6 }
  0x13   : > { %s1826_s12 = scalar_select %p1593_p11, 1, 0 }
  0x14   : > { %s1604_s18 = scalar_lea.hbm %s1815_s1, %s1159_s15  ;;  %s261_s19 = scalar_lea.vmem [#allocation2], %s1158_s14 }
  0x15   : > { %s268_s20 = sshll.u32 %s261_s19, 4  ;;  %p1610_p0 = pnand %p1281_p13, %p1576_p4  ;;  %s1606_s20 = int_to_ptr.vmem [resolvable:$true] %s268_s20 }
  0x16   : > { %s258_s28 = scalar_lea.sflag [#allocation3], %s257_s13  ;;  %s1367_s30 = scalar_lea.hbm %s1604_s18, 64 }
  0x17   : > { %p1368_p3 = scmp.ne.s32.totalorder %s1604_s18, %s1367_s30  ;;  %p1369_p5 = pneg %p1610_p0 }
  0x18   : > { %s1372_s7 = scalar_lea.hbm %s1815_s1, 128  ;;  %p1373_p4 = scmp.lt.u32.totalorder %s1604_s18, %s1815_s1 }
  0x19   : > { %p1370_p6 = pnand %p1369_p5, %p1368_p3  ;;  %p1374_p10 = scmp.lt.u32.totalorder %s1372_s7, %s1367_s30 }
  0x1a   : > { %p1376_p12 = scmp.lt.u32.totalorder %s1367_s30, %s1604_s18 }
  0x1b   : > { %p1371_p7 = pneg %p1370_p6  ;;  %p1375_p13 = por %p1374_p10, %p1373_p4 }
  0x1d   : > { %p1377_p1 = por %p1376_p12, %p1375_p13 }
  0x1f   : > { %p1378_p2 = pnand %p1377_p1, %p1371_p7 }
  0x21   : > { %1381 = shalt.err (!%p1378_p2)
}
  0x22   : > { %s1382_s13 = scalar_lea.vmem %s1606_s20, 64  ;;  %s1481_s17 = smov [#allocation2]  }
  0x23   : > { %p1383_p3 = scmp.ne.s32.totalorder %s1606_s20, %s1382_s13  ;;  %s1387_s19 = sshll.u32 %s1481_s17, 4  ;;  %s1388_s19 = int_to_ptr.vmem [resolvable:$false] %s1387_s19 }
  0x24   : > { %s1389_s8 = scalar_lea.vmem %s1388_s19, 128  ;;  %p1390_p9 = scmp.lt.s32.totalorder %s1606_s20, %s1388_s19 }
  0x25   : > { %p1385_p6 = pnand %p1383_p3, %p1369_p5  ;;  %p1391_p4 = scmp.lt.s32.totalorder %s1389_s8, %s1382_s13 }
  0x27   : > { %p1386_p11 = pneg %p1385_p6  ;;  %p1392_p10 = por %p1391_p4, %p1390_p9 }
  0x29   : > { %p1393_p12 = pnand %p1392_p10, %p1386_p11 }
  0x2b   : > { %1396 = shalt.err (!%p1393_p12)
}
  0x2c   : > { %1276 = dma.hbm_to_vmem [thread:$0]  (!%p1610_p0), %s1604_s18, 64, %s1606_s20, %s258_s28  }
  0x2d   : > { %p1828_p1 = scmp.lt.s32.totalorder %s1479_s26, 3  ;;  %p1829_p2 = scmp.ge.s32.totalorder %s1479_s26, 1 }
  0x2f   : > { %p287_p5 = pnand %p1829_p2, %p1828_p1 }
  0x30   : > { %s1646_s30 = sand.u32 (!%p287_p5), 1, %s1463_s22  }
  0x31   : > { %290 = sbr.rel (%p287_p5) target bundleno = 1162 (0x48a), region = 44  ;;  %s1822_s14 = sshll.u32 (!%p287_p5), %s1646_s30, 2 }
  0x32   : > { %s293_s7 = scalar_lea.sflag (!%p287_p5), [#allocation3], %s1646_s30  ;;  %s296_s27 = scalar_lea.vmem (!%p287_p5), [#allocation2], %s1822_s14 }
  0x38   : > { %1450 = dma.done.wait (%p1582_p8), %s293_s7, 64  }
  0x39   : > { %1452 = vsyncadd (%p1582_p8), %s293_s7, 4294967232  ;;  %p344_p9 = scmp.lt.s32.totalorder %s1471_s24, 1  ;;  %v1482_v0 = vmov 0.0   ;;  %vm1483_vm0 = vmmov 0   ;;  %v1484_v1 = vmov 0   ;;  %v1349_v2 = vld [vmem:[%s1816_s2] sm:$0xff]  }
  0x3a   : > { %1205 = vmatprep.subr.bf16.mxu0 %v1482_v0  ;;  %1213 = vmatprep.subr.bf16.mxu1 %v1482_v0  ;;  %v1350_v3 = vld [vmem:[%s1816_s2 + $0x8] sm:$0xff]   ;;  %vm391_vm1 = vcmask 261120   ;;  %v365_v7 = vld [vmem:[%s296_s27] sm:$0xf]  ;;  %s1485_s27 = smov 96   ;;  %s1486_s28 = smov 104  }
  0x3b   : > { %1209 = vmatprep.mubr.msk.bf16.mxu0 %vm1483_vm0, %v1482_v0  ;;  %1217 = vmatprep.mubr.msk.bf16.mxu1 %vm1483_vm0, %v1482_v0  ;;  %s1664_s18 = scalar_select %p344_p9, %s1471_s24, 1  ;;  %v1165_v8 = vld [vmem:[%s1817_s3] ss:$0 sm:$0xff]  ;;  %vm501_vm2 = vcmask 64512   ;;  %vm520_vm3 = vcmask 130048   ;;  %vm580_vm4 = vcmask 1043456  }
  0x3c   : > { %1348 = vset.pattern.permute.xlu0 %v1484_v1  ;;  %1206 = vmatpush3.bf16.msra.mxu0 %v1349_v2  ;;  %s1488_s16 = smov 88   ;;  %s1489_s13 = smov 120   ;;  %vm993_vm5 = vcmask 195584   ;;  %vm996_vm6 = vcmask 257024  }
  0x3d   : > { %s1164_s9 = sshll.u32 %s1664_s18, 3  ;;  %s1163_s17 = sshll.u32 %s1664_s18, 2  ;;  %1214 = vmatpush3.bf16.msra.mxu1 %v1349_v2  ;;  %1207 = vmatprep.subr.bf16.mxu0 %v1482_v0 }
  0x3e   : > { %s362_s15 = scalar_lea.vmem %s1819_s5, %s1164_s9  ;;  %1215 = vmatprep.subr.bf16.mxu1 %v1482_v0  ;;  %s347_s9 = scalar_lea.vmem %s1814_s0, %s1163_s17 }
  0x3f   : > { %v372_v4 = vld [vmem:[%s362_s15] sm:$0xff]  ;;  %s1487_s15 = smov 8   ;;  %s1490_s17 = smov 80  }
  0x40   : > { %493 = vperm.xlu0 %1348, %v372_v4   ;;  %v482_v5 = vmul.f32 0.35355338, %v372_v4  ;;  %1208 = vmatpush3.bf16.msra.mxu0 %v1350_v3  ;;  %v364_v6 = vld [vmem:[%s347_s9] sm:$0xf]  ;;  %s1491_s19 = smov 112   ;;  %s1492_s8 = smov 72  }
  0x41   : > { %1216 = vmatpush3.bf16.msra.mxu1 %v1350_v3  ;;  %1221 = vmatprep.subr.bf16.mxu0 %v1482_v0  ;;  %s1493_s7 = smov 64   ;;  %s358_s20 = scalar_lea.vmem %s1818_s4, %s1664_s18 }
  0x42   : > { %1227 = vmatprep.subr.bf16.mxu1 %v1482_v0  ;;  %v1170_v58 = vld [vmem:[%s358_s20] ss:$0 sm:$0xff]  ;;  %s1494_s18 = smov 48   ;;  %p1831_p11 = scmp.ne.s32.totalorder %s1825_s10, 0 }
  0x43   : > { %1210 = vmatmul.mubr.msk.bf16.vlgmr.msra.gmra.mrb[0].mxu0 %vm391_vm1, %v364_v6 }
  0x44   : > { %485 = vperm.xlu0 %1348, %v482_v5   ;;  %1218 = vmatmul.mubr.msk.bf16.vlgmr.msra.gmra.mrb[0].mxu1 %vm391_vm1, %v365_v7 }
  0x45   : > { %1223 = vmatprep.mubr.msk.bf16.mxu0 %vm1483_vm0, %v1482_v0  ;;  %1229 = vmatprep.mubr.msk.bf16.mxu1 %vm1483_vm0, %v1482_v0 }
  0xbf   : > { %v494_v9 = vpop.permute.xlu0 %493 }
  0xc3   : > { %v486_v25 = vpop.permute.xlu0 %485 }
 0x116   : > { %v429_v10 = vpop.f32.mrb[0].mxu0 }
 0x117   : > { %v472_v11 = vpop.f32.mrb[0].mxu1  ;;  %v430_v12 = vadd.f32 %v1165_v8, %v429_v10  ;;  %v1211_v14 = vpop.f32.mrb[1].mxu0 }
 0x118   : > { %v473_v13 = vadd.f32 %v1165_v8, %v472_v11  ;;  %v1219_v15 = vpop.f32.mrb[1].mxu1  ;;  %v432_v16 = vpop.f32.mrb[2].mxu0 }
 0x119   : > { %v475_v17 = vpop.f32.mrb[2].mxu1  ;;  %v1691_v18 = vpack.c.bf16 %v430_v12, %v430_v12  ;;  %v1212_v20 = vpop.f32.mrb[3].mxu0  ;;  %v480_v22 = vadd.f32 1.0, %v430_v12  ;;  %v478_v28 = vmul.f32 0.35355338, %v430_v12 }
 0x11a   : > { %v496_v19 = vmul.f32 %v494_v9, %v473_v13  ;;  %v1220_v21 = vpop.f32.mrb[3].mxu1 }
 0x11b   : > { %v481_v24 = vmul.f32 %v480_v22, %v473_v13  ;;  %506 = vrot.lane.b32.xlu1 %v1691_v18, %s1485_s27  ;;  %v479_v29 = vpack.c.bf16 %v478_v28, %v478_v28 }
 0x11c   : > { %v497_v23 = vpack.c.bf16 %v496_v19, %v496_v19 }
 0x11d   : > { %v488_v26 = vmul.f32 %v486_v25, %v481_v24 }
 0x11f   : > { %v489_v27 = vpack.c.bf16 %v488_v26, %v488_v26  ;;  %509 = vrot.lane.b32.xlu1 %v497_v23, %s1486_s28 }
 0x121   : > { %499 = vrot.lane.b32.xlu0 %v489_v27, %s1487_s15 }
 0x123   : > { %632 = vrot.lane.b32.xlu1 %v1691_v18, %s1488_s16 }
 0x125   : > { %634 = vrot.lane.b32.xlu0 %v497_v23, %s1485_s27  ;;  %s1495_s27 = smov 40  }
 0x127   : > { %627 = vrot.lane.b32.xlu1 %v479_v29, %s1489_s13 }
 0x129   : > { %750 = vrot.lane.b32.xlu0 %v1691_v18, %s1490_s17 }
 0x12b   : > { %752 = vrot.lane.b32.xlu1 %v497_v23, %s1488_s16  ;;  %s1497_s16 = smov 16  }
 0x12d   : > { %743 = vrot.lane.b32.xlu0 %v479_v29, %s1491_s19 }
 0x12f   : > { %745 = vrot.lane.b32.xlu1 %v489_v27, %s1489_s13  ;;  %s1498_s13 = smov 24  }
 0x131   : > { %868 = vrot.lane.b32.xlu0 %v1691_v18, %s1492_s8 }
 0x133   : > { %870 = vrot.lane.b32.xlu1 %v497_v23, %s1490_s17  ;;  %s1830_s17 = sshll.u32 %s1646_s30, 2 }
 0x135   : > { %861 = vrot.lane.b32.xlu0 %v479_v29, %s1486_s28  ;;  %s1496_s28 = smov 56  }
 0x137   : > { %863 = vrot.lane.b32.xlu1 %v489_v27, %s1491_s19  ;;  %s343_s19 = scalar_lea.vmem [#allocation5], %s1830_s17 }
 0x138   : > { %s1013_s8 = sshll.u32 %s343_s19, 4  ;;  %s1767_s8 = int_to_ptr.vmem [resolvable:$true] %s1013_s8 }
 0x139   : > { %s1397_s20 = scalar_lea.vmem %s1767_s8, 64 }
 0x13a   : > { %p1398_p8 = scmp.ne.s32.totalorder %s1767_s8, %s1397_s20 }
 0x13b   : > { %575 = vrot.lane.b32.xlu1 %v1691_v18, %s1493_s7 }
 0x13c   : > { %p1399_p0 = pnand %p1398_p8, %p1831_p11 }
 0x13e   : > { %p1400_p7 = pneg %p1399_p0 }
 0x18d   : > { %v507_v30 = vpop.permute.xlu1 %506 }
 0x191   : > { %v510_v31 = vpop.permute.xlu1 %509 }
 0x192   : > { %v513_v32 = vsel %vm501_vm2, %v507_v30, %v510_v31 }
 0x193   : > { %v523_v33 = vsel %vm520_vm3, %v513_v32, 0  ;;  %v500_v34 = vpop.permute.xlu0 %499 }
 0x194   : > { %1222 = vmatpush3.bf16.xpose.msra.mxu0 %v523_v33  ;;  %v504_v39 = vsel %vm501_vm2, %v479_v29, %v500_v34 }
 0x195   : > { %v633_v35 = vpop.permute.xlu1 %632  ;;  %1233 = vmatprep.subr.bf16.mxu0 %v1482_v0 }
 0x197   : > { %v635_v36 = vpop.permute.xlu0 %634 }
 0x198   : > { %v638_v37 = vsel %vm501_vm2, %v633_v35, %v635_v36 }
 0x199   : > { %v628_v38 = vpop.permute.xlu1 %627  ;;  %v641_v40 = vsel %vm520_vm3, %v638_v37, 0 }
 0x19a   : > { %v631_v46 = vsel %vm501_vm2, %v628_v38, %v489_v27 }
 0x19b   : > { %v751_v41 = vpop.permute.xlu0 %750  ;;  %1224 = vmatmul.mubr.msk.bf16.vlgmr.msra.gmra.mrb[4].mxu0 %vm520_vm3, %v504_v39 }
 0x19c   : > { %1234 = vmatpush3.bf16.xpose.msra.mxu0 %v641_v40  ;;  %1235 = vmatprep.mubr.msk.bf16.mxu0 %vm1483_vm0, %v1482_v0 }
 0x19d   : > { %v753_v42 = vpop.permute.xlu1 %752  ;;  %1245 = vmatprep.subr.bf16.mxu0 %v1482_v0 }
 0x19e   : > { %v756_v43 = vsel %vm501_vm2, %v751_v41, %v753_v42 }
 0x19f   : > { %v744_v44 = vpop.permute.xlu0 %743  ;;  %v759_v47 = vsel %vm520_vm3, %v756_v43, 0 }
 0x1a1   : > { %v746_v45 = vpop.permute.xlu1 %745 }
 0x1a2   : > { %v749_v52 = vsel %vm501_vm2, %v744_v44, %v746_v45 }
 0x1a3   : > { %1236 = vmatmul.mubr.msk.bf16.vlgmr.msra.gmra.mrb[8].mxu0 %vm520_vm3, %v631_v46  ;;  %v869_v49 = vpop.permute.xlu0 %868 }
 0x1a4   : > { %1246 = vmatpush3.bf16.xpose.msra.mxu0 %v759_v47  ;;  %1247 = vmatprep.mubr.msk.bf16.mxu0 %vm1483_vm0, %v1482_v0 }
 0x1a5   : > { %v871_v48 = vpop.permute.xlu1 %870  ;;  %1257 = vmatprep.subr.bf16.mxu0 %v1482_v0 }
 0x1a6   : > { %v874_v50 = vsel %vm501_vm2, %v869_v49, %v871_v48 }
 0x1a7   : > { %v877_v53 = vsel %vm520_vm3, %v874_v50, 0  ;;  %v862_v56 = vpop.permute.xlu0 %861 }
 0x1a9   : > { %v864_v51 = vpop.permute.xlu1 %863 }
 0x1aa   : > { %v867_v57 = vsel %vm501_vm2, %v862_v56, %v864_v51 }
 0x1ab   : > { %1248 = vmatmul.mubr.msk.bf16.vlgmr.msra.gmra.mrb[12].mxu0 %vm520_vm3, %v749_v52 }
 0x1ac   : > { %1258 = vmatpush3.bf16.xpose.msra.mxu0 %v877_v53  ;;  %1259 = vmatprep.mubr.msk.bf16.mxu0 %vm1483_vm0, %v1482_v0 }
 0x1ad   : > { %v576_v54 = vpop.permute.xlu1 %575 }
 0x1ae   : > { %v582_v55 = vsel %vm580_vm4, %v576_v54, 0 }
 0x1af   : > { %1228 = vmatpush3.bf16.msra.mxu1 %v582_v55 }
 0x1b0   : > { %1239 = vmatprep.subr.bf16.mxu1 %v1482_v0 }
 0x1b3   : > { %1260 = vmatmul.mubr.msk.bf16.vlgmr.msra.gmra.mrb[16].mxu0 %vm520_vm3, %v867_v57 }
 0x26e   : > { %v559_v59 = vpop.f32.mrb[4].mxu0 }
 0x26f   : > { %v560_v60 = vadd.f32 %v1170_v58, %v559_v59  ;;  %v1225_v61 = vpop.f32.mrb[5].mxu0 }
 0x270   : > { %v562_v62 = vpop.f32.mrb[6].mxu0 }
 0x271   : > { %v1226_v63 = vpop.f32.mrb[7].mxu0  ;;  %v565_v1 = vsel %vm501_vm2, %v560_v60, -inf }
 0x272   : > { %566 = vmax.xlane.f32.xlu0 %v565_v1 }
 0x276   : > { %v677_v2 = vpop.f32.mrb[8].mxu0 }
 0x277   : > { %v678_v3 = vadd.f32 %v1170_v58, %v677_v2  ;;  %v1237_v4 = vpop.f32.mrb[9].mxu0 }
 0x278   : > { %v680_v5 = vpop.f32.mrb[10].mxu0 }
 0x279   : > { %v1238_v6 = vpop.f32.mrb[11].mxu0  ;;  %v683_v7 = vsel %vm501_vm2, %v678_v3, -inf }
 0x27a   : > { %684 = vmax.xlane.f32.xlu1 %v683_v7 }
 0x27e   : > { %v795_v8 = vpop.f32.mrb[12].mxu0 }
 0x27f   : > { %v796_v9 = vadd.f32 %v1170_v58, %v795_v8  ;;  %v1249_v10 = vpop.f32.mrb[13].mxu0 }
 0x280   : > { %v798_v11 = vpop.f32.mrb[14].mxu0 }
 0x281   : > { %v1250_v12 = vpop.f32.mrb[15].mxu0  ;;  %v801_v13 = vsel %vm501_vm2, %v796_v9, -inf }
 0x282   : > { %802 = vmax.xlane.f32.xlu0 %v801_v13 }
 0x286   : > { %v913_v14 = vpop.f32.mrb[16].mxu0 }
 0x287   : > { %v914_v15 = vadd.f32 %v1170_v58, %v913_v14  ;;  %v1261_v16 = vpop.f32.mrb[17].mxu0 }
 0x288   : > { %v916_v17 = vpop.f32.mrb[18].mxu0 }
 0x289   : > { %v1262_v19 = vpop.f32.mrb[19].mxu0  ;;  %v919_v20 = vsel %vm501_vm2, %v914_v15, -inf }
 0x28a   : > { %920 = vmax.xlane.f32.xlu0 %v919_v20 }
 0x28b   : > { %811 = vrot.lane.b32.xlu1 %v1691_v18, %s1494_s18  ;;  %s1499_s18 = smov [#allocation5]  }
 0x28f   : > { %929 = vrot.lane.b32.xlu1 %v1691_v18, %s1495_s27  ;;  %s1401_s27 = sshll.u32 %s1499_s18, 4  ;;  %s1402_s27 = int_to_ptr.vmem [resolvable:$false] %s1401_s27 }
 0x290   : > { %p1404_p13 = scmp.lt.s32.totalorder %s1767_s8, %s1402_s27 }
 0x2a0   : > { %693 = vrot.lane.b32.xlu0 %v1691_v18, %s1496_s28  ;;  %s1403_s28 = scalar_lea.vmem %s1402_s27, 128 }
 0x2a1   : > { %p1405_p3 = scmp.lt.s32.totalorder %s1403_s28, %s1397_s20 }
 0x2a3   : > { %p1406_p6 = por %p1405_p3, %p1404_p13 }
 0x2a5   : > { %p1407_p4 = pnand %p1406_p6, %p1400_p7 }
 0x2ff   : > { %v567_v21 = vpop.xlane.xlu0 %566 }
 0x300   : > { %v568_v22 = vsub.f32 %v560_v60, %v567_v21 }
 0x302   : > { %v569_v23 = vmul.f32 1.442695, %v568_v22 }
 0x304   : > { %1351 = vpow2.f32 %v569_v23 }
 0x307   : > { %v685_v24 = vpop.xlane.xlu1 %684 }
 0x308   : > { %v686_v25 = vsub.f32 %v678_v3, %v685_v24 }
 0x30a   : > { %v687_v26 = vmul.f32 1.442695, %v686_v25 }
 0x30b   : > { %v812_v38 = vpop.permute.xlu1 %811 }
 0x30c   : > { %1353 = vpow2.f32 %v687_v26  ;;  %v817_v42 = vsel %vm580_vm4, %v812_v38, 0 }
 0x30e   : > { %v1352_v27 = vpop.eup %1351 }
 0x30f   : > { %v803_v28 = vpop.xlane.xlu0 %802  ;;  %v574_v29 = vpack.c.bf16 %v1352_v27, %v1352_v27  ;;  %v930_v43 = vpop.permute.xlu1 %929  ;;  %v571_v48 = vsel %vm501_vm2, %v1352_v27, 0.0 }
 0x310   : > { %v804_v30 = vsub.f32 %v796_v9, %v803_v28  ;;  %v935_v47 = vsel %vm580_vm4, %v930_v43, 0 }
 0x311   : > { %1230 = vmatmul.mubr.msk.bf16.vlgmr.msra.gmra.mrb[4].mxu1 %vm501_vm2, %v574_v29 }
 0x312   : > { %v805_v31 = vmul.f32 1.442695, %v804_v30  ;;  %1241 = vmatprep.mubr.msk.bf16.mxu1 %vm1483_vm0, %v1482_v0 }
 0x314   : > { %1355 = vpow2.f32 %v805_v31 }
 0x316   : > { %v1354_v18 = vpop.eup %1353 }
 0x317   : > { %v921_v32 = vpop.xlane.xlu0 %920  ;;  %v689_v33 = vsel %vm501_vm2, %v1354_v18, 0.0  ;;  %v692_v40 = vpack.c.bf16 %v1354_v18, %v1354_v18 }
 0x318   : > { %v922_v34 = vsub.f32 %v914_v15, %v921_v32  ;;  %690 = vadd.xlane.f32.xlu0 %v689_v33 }
 0x31a   : > { %v923_v35 = vmul.f32 1.442695, %v922_v34 }
 0x31b   : > { %v694_v36 = vpop.permute.xlu0 %693 }
 0x31c   : > { %1357 = vpow2.f32 %v923_v35  ;;  %v699_v37 = vsel %vm580_vm4, %v694_v36, 0 }
 0x31d   : > { %1240 = vmatpush3.bf16.msra.mxu1 %v699_v37 }
 0x31e   : > { %v1356_v39 = vpop.eup %1355  ;;  %1251 = vmatprep.subr.bf16.mxu1 %v1482_v0 }
 0x31f   : > { %v807_v41 = vsel %vm501_vm2, %v1356_v39, 0.0  ;;  %v810_v45 = vpack.c.bf16 %v1356_v39, %v1356_v39 }
 0x320   : > { %808 = vadd.xlane.f32.xlu1 %v807_v41  ;;  %1242 = vmatmul.mubr.msk.bf16.vlgmr.msra.gmra.mrb[8].mxu1 %vm501_vm2, %v692_v40 }
 0x321   : > { %1252 = vmatpush3.bf16.msra.mxu1 %v817_v42  ;;  %1253 = vmatprep.mubr.msk.bf16.mxu1 %vm1483_vm0, %v1482_v0 }
 0x322   : > { %1263 = vmatprep.subr.bf16.mxu1 %v1482_v0 }
 0x326   : > { %v1358_v44 = vpop.eup %1357 }
 0x327   : > { %v925_v46 = vsel %vm501_vm2, %v1358_v44, 0.0  ;;  %v928_v49 = vpack.c.bf16 %v1358_v44, %v1358_v44 }
 0x328   : > { %926 = vadd.xlane.f32.xlu0 %v925_v46  ;;  %1254 = vmatmul.mubr.msk.bf16.vlgmr.msra.gmra.mrb[12].mxu1 %vm501_vm2, %v810_v45 }
 0x329   : > { %1264 = vmatpush3.bf16.msra.mxu1 %v935_v47  ;;  %1265 = vmatprep.mubr.msk.bf16.mxu1 %vm1483_vm0, %v1482_v0 }
 0x32c   : > { %572 = vadd.xlane.f32.xlu0 %v571_v48 }
 0x330   : > { %1266 = vmatmul.mubr.msk.bf16.vlgmr.msra.gmra.mrb[16].mxu1 %vm501_vm2, %v928_v49 }
 0x3a5   : > { %v691_v52 = vpop.xlane.xlu0 %690 }
 0x3a6   : > { %1359 = vrcp.f32 %v691_v52 }
 0x3ad   : > { %v809_v55 = vpop.xlane.xlu1 %808 }
 0x3ae   : > { %1361 = vrcp.f32 %v809_v55 }
 0x3b0   : > { %v1360_v56 = vpop.eup %1359 }
 0x3b5   : > { %v927_v0 = vpop.xlane.xlu0 %926 }
 0x3b6   : > { %1363 = vrcp.f32 %v927_v0 }
 0x3b8   : > { %v1362_v62 = vpop.eup %1361 }
 0x3b9   : > { %v573_v11 = vpop.xlane.xlu0 %572 }
 0x3ba   : > { %1365 = vrcp.f32 %v573_v11 }
 0x3c0   : > { %v1364_v5 = vpop.eup %1363 }
 0x3c4   : > { %v1366_v12 = vpop.eup %1365 }
 0x3e4   : > { %v618_v50 = vpop.f32.mrb[4].mxu1 }
 0x3e5   : > { %v1231_v51 = vpop.f32.mrb[5].mxu1  ;;  %v625_v14 = vmul.f32 %v1366_v12, %v618_v50 }
 0x3e6   : > { %v621_v53 = vpop.f32.mrb[6].mxu1 }
 0x3e7   : > { %v1232_v54 = vpop.f32.mrb[7].mxu1 }
 0x3f3   : > { %v735_v57 = vpop.f32.mrb[8].mxu1 }
 0x3f4   : > { %v742_v58 = vmul.f32 %v1360_v56, %v735_v57  ;;  %v1243_v59 = vpop.f32.mrb[9].mxu1 }
 0x3f5   : > { %v738_v60 = vpop.f32.mrb[10].mxu1 }
 0x3f6   : > { %v1244_v61 = vpop.f32.mrb[11].mxu1  ;;  %980 = vrot.lane.b32.xlu1 %v742_v58, %s1487_s15  ;;  %s1180_s15 = sshll.u32 %s1471_s24, 6  ;;  %s999_s24 = scalar_lea.sflag [#allocation4], %s1646_s30 }
 0x3f7   : > { %s1765_s14 = scalar_lea.hbm %s1820_s6, %s1180_s15 }
 0x3fb   : > { %v853_v63 = vpop.f32.mrb[12].mxu1 }
 0x3fc   : > { %v860_v1 = vmul.f32 %v1362_v62, %v853_v63  ;;  %v1255_v2 = vpop.f32.mrb[13].mxu1 }
 0x3fd   : > { %v856_v3 = vpop.f32.mrb[14].mxu1 }
 0x3fe   : > { %984 = vrot.lane.b32.xlu0 %v860_v1, %s1497_s16  ;;  %v1256_v4 = vpop.f32.mrb[15].mxu1 }
 0x403   : > { %v971_v6 = vpop.f32.mrb[16].mxu1 }
 0x404   : > { %v978_v7 = vmul.f32 %v1364_v5, %v971_v6  ;;  %v1267_v8 = vpop.f32.mrb[17].mxu1 }
 0x405   : > { %v974_v9 = vpop.f32.mrb[18].mxu1 }
 0x406   : > { %v1268_v10 = vpop.f32.mrb[19].mxu1  ;;  %988 = vrot.lane.b32.xlu1 %v978_v7, %s1498_s13 }
 0x468   : > { %v981_v13 = vpop.permute.xlu1 %980 }
 0x469   : > { %v991_v16 = vsel %vm501_vm2, %v625_v14, %v981_v13 }
 0x470   : > { %v985_v15 = vpop.permute.xlu0 %984 }
 0x471   : > { %v992_v17 = vsel %vm520_vm3, %v991_v16, %v985_v15 }
 0x478   : > { %v989_v19 = vpop.permute.xlu1 %988 }
 0x479   : > { %v994_v20 = vsel %vm993_vm5, %v992_v17, %v989_v19 }
 0x47a   : > { %v995_v21 = vpack.c.bf16 %v994_v20, %v994_v20 }
 0x47c   : > { %997 = vst.msk [vmem:[%s343_s19] sm:$0xf] %vm996_vm6, %v995_v21 }
 0x47d   : > { %1410 = shalt.err (!%p1407_p4)
}
 0x47e   : > { %s1411_s30 = scalar_lea.hbm %s1765_s14, 64  ;;  %s1415_s15 = scalar_lea.hbm %s1820_s6, 128 }
 0x47f   : > { %p1412_p10 = scmp.ne.s32.totalorder %s1765_s14, %s1411_s30  ;;  %p1416_p2 = scmp.lt.u32.totalorder %s1765_s14, %s1820_s6 }
 0x480   : > { %p1417_p5 = scmp.lt.u32.totalorder %s1415_s15, %s1411_s30  ;;  %p1419_p8 = scmp.lt.u32.totalorder %s1411_s30, %s1765_s14 }
 0x481   : > { %p1413_p12 = pnand %p1412_p10, %p1831_p11 }
 0x482   : > { %p1418_p9 = por %p1417_p5, %p1416_p2 }
 0x483   : > { %p1414_p1 = pneg %p1413_p12 }
 0x484   : > { %p1420_p0 = por %p1419_p8, %p1418_p9 }
 0x486   : > { %p1421_p7 = pnand %p1420_p0, %p1414_p1 }
 0x488   : > { %1424 = shalt.err (!%p1421_p7)
}
 0x489   : > { %1271 = dma.vmem_to_hbm [thread:$0]  (%p1831_p11), %s1767_s8, 64, %s1765_s14, %s999_s24  }
 0x48a PF: > { %s1025_s7 = sand.u32 1, %s1459_s21   ;;  %p1832_p13 = scmp.ne.s32.totalorder %s1826_s12, 0 }
 0x48b   : > { %p1833_p3 = scmp.ge.s32.totalorder %s1479_s26, 2  ;;  %s1026_s9 = scalar_lea.sflag [#allocation4], %s1025_s7 }
 0x48d   : > { %p1278_p6 = pnand %p1833_p3, %p1832_p13 }
 0x48f   : > { %1454 = dma.done.wait (!%p1278_p6), %s1026_s9, 64  }
 0x490   : > { %1456 = vsyncadd (!%p1278_p6), %s1026_s9, 4294967232  ;;  %s22_s26 = sadd.s32 1, %s1479_s26   ;;  %s1834_s21 = smov %s1463_s22 }
 0x491   : > { %p19_p4 = scmp.ge.s32.totalorder %s22_s26, 4   ;;  %s1835_s22 = smov %s1467_s23 }
 0x492   : > { %s1836_s23 = smov %s1591_s11  ;;  %s1837_s24 = smov %s1475_s25 }
 0x493   : > { %s1838_s25 = smov %s1840_s29  ;;  %21 = sbr.rel (!%p19_p4) target bundleno = 6 (0x6), region = 104 }
 0x49a   :  { %1031 = vsyncpa [#allocation3], 1 }
 0x49b   :  { %1033 = vsyncpa [#allocation3 + $0x1], 1 }
 0x49c   :  { %1034 = vsyncpa [#allocation4], 1 }
 0x49d   :  { %1036 = vsyncpa [#allocation4 + $0x1], 1 }

</bundles_post_ra>
